<compile_context>
chip_gen: v7x
topology: tpu7x:2x2x1
jax: 0.10.0
libtpu: 0.0.40
codegen_flags: <defaults>
</compile_context>

<pallas_src>
import functools

import jax
import jax.numpy as jnp
from jax.experimental import pallas as pl
from jax.experimental.pallas import tpu as pltpu

# ----- hyper-params (small, consistent with the module's __init__) -----------
VOCAB_SIZE = 32
EMBED_DIM = 32          # pb.dis_embed_dim
PADDING_IDX = 0         # pb.padding_idx
SEQ_LEN = 8
BATCH = 2
FILTER_SIZES = (2, 3)   # pb.dis_filter_sizes
NUM_FILTERS = (16, 16)  # pb.dis_num_filters
FEATURE_DIM = sum(NUM_FILTERS)   # pb.dis_feature_dim = 32
NORM_INIT_STD = 0.1     # pb.norm_init_std ('normal' init dist)

SUBLANE = 8
NEG_INF = -1e30

# Packed parameter buffer layout (single f32 VMEM input, S*F = 256 lanes wide):
#   rows 0 : S*V          lanes 0:S*F -> W_big (fused gather+conv weight)
#   rows S*V : S*V+F      lanes 0:F   -> highway weight, transposed (in, out)
#   row  TAIL+0           lanes 0:F   -> highway bias
#   row  TAIL+1           lanes 0:F   -> conv biases (conv0 | conv1)
#   row  TAIL+2           lanes 0:F   -> fc weight (row vector)
#   row  TAIL+3           lane  0     -> fc bias
#   row  TAIL+4           lanes 0:S*F -> additive time-validity mask (0 / -1e30)
SV = SEQ_LEN * VOCAB_SIZE            # 256 (matmul K / W_big rows)
SF = SEQ_LEN * FEATURE_DIM           # 256 (matmul N / lane width)
HW_ROW0 = SV                         # 256
TAIL_ROW0 = SV + FEATURE_DIM         # 288
PARAM_ROWS = TAIL_ROW0 + SUBLANE     # 296

assert SEQ_LEN & (SEQ_LEN - 1) == 0, "lane-roll max-reduce assumes pow2 SEQ_LEN"
assert SF % 128 == 0, "packed params / matmul output should be lane-dense"

_BATCH_BUCKETS = (8, 64, 512)


def _disc_kernel(batch_pad, tgt_ref, params_ref, out_ref):
    """one-hot -> single fused gather+conv matmul -> masked time max -> highway -> fc."""
    # ---- one-hot over (position, vocab): lane l matches iff tgt[b, l] == l --
    lane = jax.lax.broadcasted_iota(jnp.int32, (batch_pad, SV), 1)
    onehot = (lane == tgt_ref[...]).astype(jnp.float32)             # (B, S*V)

    # ---- single MXU push: gather + all conv taps + all time shifts ----------
    w_big = params_ref[0:SV, :]                                     # (S*V, S*F)
    y = jnp.dot(onehot, w_big, preferred_element_type=jnp.float32)  # (B, S*F)

    # ---- small parameters (one aligned 8-row read, sliced in-register) ------
    tail = params_ref[TAIL_ROW0:TAIL_ROW0 + SUBLANE, :]             # (8, S*F)
    hw_b = tail[0:1, 0:FEATURE_DIM]                                 # (1, F)
    conv_bias = tail[1:2, 0:FEATURE_DIM]                            # (1, F)
    fc_w = tail[2:3, 0:FEATURE_DIM]                                 # (1, F)
    fc_b = tail[3:4, 0:1]                                           # (1, 1)
    tmask = tail[4:5, :]                                            # (1, S*F)

    # ---- global max pool over time (lane-roll reduce on the idle XLU) -------
    # lane l = t*F + c; positions with t >= T_conv(c) were zero columns in
    # W_big and are pushed to -1e30 by the additive mask before the max.
    m = y + tmask
    groups = SEQ_LEN
    while groups > 1:
        groups //= 2
        m = jnp.maximum(m, pltpu.roll(m, groups * FEATURE_DIM, axis=1))
    pooled = m[:, 0:FEATURE_DIM]                                    # (B, F)

    # max_t relu(x_t + b) == relu(max_t x_t + b)  (relu is monotonic)
    pred = jnp.maximum(pooled + conv_bias, 0.0)                     # (B, F)

    # ---- highway unit --------------------------------------------------------
    hw_wT = params_ref[HW_ROW0:HW_ROW0 + FEATURE_DIM, 0:FEATURE_DIM]  # (F, F)
    h = jnp.dot(pred, hw_wT, preferred_element_type=jnp.float32) + hw_b
    gate = jax.nn.sigmoid(h)
    pred = gate * jnp.maximum(h, 0.0) + (1.0 - gate) * pred

    # ---- fc -------------------------------------------------------------------
    # TODO(synk): dropout is eval-mode identity here (no in-kernel PRNG mask).
    out_ref[...] = jnp.sum(pred * fc_w, axis=1, keepdims=True) + fc_b


@jax.jit
def _forward_padded(ids, packed):
    """ids: (B_pad, S) int32 (bucket-padded); packed: (PARAM_ROWS, S*F) f32."""
    batch_pad = ids.shape[0]
    # One-hot "targets": target[b, s*V + v] = s*V + ids[b, s]; compared against
    # a lane iota in-kernel -> fused gather with only 2 input DMAs (ids+params).
    base = (jnp.arange(SEQ_LEN, dtype=jnp.int32) * VOCAB_SIZE)[None, :]
    target = jnp.repeat(ids.astype(jnp.int32) + base, VOCAB_SIZE, axis=1)

    kernel = functools.partial(_disc_kernel, batch_pad)
    vmem = pl.BlockSpec(memory_space=pltpu.MemorySpace.VMEM)
    # TODO(synk): for large batches add a batch grid axis with
    #             dimension_semantics=("parallel",) so both v7x TensorCores get
    #             work, and set vmem_limit_bytes against v7x's 64 MiB VMEM.
    return pl.pallas_call(
        kernel,
        out_shape=jax.ShapeDtypeStruct((batch_pad, 1), jnp.float32),
        in_specs=[vmem, vmem],
        out_specs=vmem,
    )(target, packed)


def _bucket_batch(b):
    """Pad to a fixed bucket so varying batch sizes don't force recompiles."""
    for cand in _BATCH_BUCKETS:
        if b <= cand:
            return cand
    top = _BATCH_BUCKETS[-1]
    return ((b + top - 1) // top) * top


def discriminator_forward(sentence, packed):
    """sentence: (B, S) int token ids -> (B, 1) f32 logits."""
    b = sentence.shape[0]
    b_pad = _bucket_batch(b)
    ids = jnp.full((b_pad, SEQ_LEN), PADDING_IDX, jnp.int32)
    ids = ids.at[:b, :].set(sentence.astype(jnp.int32))
    return _forward_padded(ids, packed)[:b]


def pack_params(params):
    """Fold the embedding table into the conv weights and pack ALL parameters
    into a single (PARAM_ROWS, S*F) f32 buffer (2 kernel input DMAs total)."""
    emb = params["embedding"].astype(jnp.float32)                   # (V, E)
    buf = jnp.zeros((PARAM_ROWS, SF), jnp.float32)
    tmask = jnp.zeros((SF,), jnp.float32)
    conv_bias = []
    ch0 = 0
    for ci, (nf, f) in enumerate(zip(NUM_FILTERS, FILTER_SIZES)):
        cw = params[f"conv{ci}_w"]                                  # (nf, f, E)
        conv_bias.append(params[f"conv{ci}_b"][0])                  # (nf,)
        t_len = SEQ_LEN - f + 1
        for j in range(f):
            fused = emb @ cw[:, j, :].T                             # (V, nf)
            for t in range(t_len):
                r0 = (t + j) * VOCAB_SIZE
                c0 = t * FEATURE_DIM + ch0
                buf = buf.at[r0:r0 + VOCAB_SIZE, c0:c0 + nf].set(fused)
        for t in range(t_len, SEQ_LEN):                             # invalid t
            c0 = t * FEATURE_DIM + ch0
            tmask = tmask.at[c0:c0 + nf].set(NEG_INF)
        ch0 += nf
    conv_bias = jnp.concatenate(conv_bias)                          # (F,)

    buf = buf.at[HW_ROW0:HW_ROW0 + FEATURE_DIM, 0:FEATURE_DIM].set(
        params["highway_w"].T)
    buf = buf.at[TAIL_ROW0 + 0, 0:FEATURE_DIM].set(params["highway_b"][0])
    buf = buf.at[TAIL_ROW0 + 1, 0:FEATURE_DIM].set(conv_bias)
    buf = buf.at[TAIL_ROW0 + 2, 0:FEATURE_DIM].set(params["fc_w"][0])
    buf = buf.at[TAIL_ROW0 + 3, 0].set(params["fc_b"][0, 0])
    buf = buf.at[TAIL_ROW0 + 4, :].set(tmask)
    return buf


def init_params(key):
    """Deterministic 'normal' init (std = NORM_INIT_STD), padding row zeroed."""
    ks = jax.random.split(key, 8)
    emb = NORM_INIT_STD * jax.random.normal(ks[0], (VOCAB_SIZE, EMBED_DIM),
                                            jnp.float32)
    emb = emb.at[PADDING_IDX].set(0.0)  # padding_idx row is zero

    params = {"embedding": emb}
    for ci, (nf, f) in enumerate(zip(NUM_FILTERS, FILTER_SIZES)):
        kw, kb = jax.random.split(ks[1 + ci])
        # PyTorch Conv2d weight (nf, 1, f, E) -> stored as (nf, f, E)
        params[f"conv{ci}_w"] = NORM_INIT_STD * jax.random.normal(
            kw, (nf, f, EMBED_DIM), jnp.float32)
        params[f"conv{ci}_b"] = NORM_INIT_STD * jax.random.normal(
            kb, (1, nf), jnp.float32)

    params["highway_w"] = NORM_INIT_STD * jax.random.normal(
        ks[4], (FEATURE_DIM, FEATURE_DIM), jnp.float32)   # nn.Linear (out, in)
    params["highway_b"] = NORM_INIT_STD * jax.random.normal(
        ks[5], (1, FEATURE_DIM), jnp.float32)
    params["fc_w"] = NORM_INIT_STD * jax.random.normal(
        ks[6], (1, FEATURE_DIM), jnp.float32)             # nn.Linear(F, 1) weight
    params["fc_b"] = NORM_INIT_STD * jax.random.normal(
        ks[7], (1, 1), jnp.float32)
    return params


def reference_forward(sentence, params):
    """Pure-JAX reference mirroring the PyTorch forward (eval-mode dropout)."""
    emb = jnp.take(params["embedding"], sentence, axis=0)  # (B, S, E)
    pools = []
    for ci, (nf, f) in enumerate(zip(NUM_FILTERS, FILTER_SIZES)):
        w = params[f"conv{ci}_w"]           # (nf, f, E)
        b = params[f"conv{ci}_b"][0]        # (nf,)
        outs = []
        for t in range(SEQ_LEN - f + 1):
            window = emb[:, t:t + f, :].reshape(sentence.shape[0], -1)
            outs.append(window @ w.reshape(nf, -1).T + b)
        conv = jax.nn.relu(jnp.stack(outs, axis=-1))       # (B, nf, T)
        pools.append(conv.max(axis=-1))
    pred = jnp.concatenate(pools, axis=1)
    h = pred @ params["highway_w"].T + params["highway_b"]
    sig = jax.nn.sigmoid(h)
    pred = sig * jax.nn.relu(h) + (1.0 - sig) * pred
    return pred @ params["fc_w"].T + params["fc_b"]


if __name__ == "__main__":
    key = jax.random.PRNGKey(0)
    k_param, k_data = jax.random.split(key)

    params = init_params(k_param)
    packed = pack_params(params)
    sentence = jax.random.randint(k_data, (BATCH, SEQ_LEN), 0, VOCAB_SIZE,
                                  dtype=jnp.int32)

    out = discriminator_forward(sentence, packed)
    out = jax.block_until_ready(out)

    ref = reference_forward(sentence, params)
    assert out.shape == (BATCH, 1)
    assert jnp.allclose(out, ref, atol=1e-4, rtol=1e-4), (out, ref)

    print("KERNEL_OK")
</pallas_src>

<mosaic_0001>
module attributes {stable_mosaic.version = 11 : i64} {
  func.func @_disc_kernel(%arg0: memref<8x256xi32, #tpu.memory_space<vmem>>, %arg1: memref<296x256xf32, #tpu.memory_space<vmem>>, %arg2: memref<8x1xf32, #tpu.memory_space<vmem>>) attributes {dimension_semantics = [], scalar_prefetch = 0 : i64, scratch_operands = 0 : i64, tpu.core_type = #tpu.core_type<tc>} {
    %0 = tpu.iota {dimensions = array<i32: 1>} : vector<8x256xi32>
    %c0 = arith.constant 0 : index
    %c0_0 = arith.constant 0 : index
    %1 = vector.load %arg0[%c0, %c0_0] : memref<8x256xi32, #tpu.memory_space<vmem>>, vector<8x256xi32>
    %2 = arith.cmpi eq, %0, %1 : vector<8x256xi32>
    %3 = arith.extui %2 : vector<8x256xi1> to vector<8x256xi32>
    %4 = arith.sitofp %3 : vector<8x256xi32> to vector<8x256xf32>
    %c0_1 = arith.constant 0 : index
    %c0_2 = arith.constant 0 : index
    %5 = vector.load %arg1[%c0_1, %c0_2] : memref<296x256xf32, #tpu.memory_space<vmem>>, vector<256x256xf32>
    %cst = arith.constant dense<0.000000e+00> : vector<8x256xf32>
    %6 = tpu.matmul %4, %5, %cst {dimension_numbers = #tpu.dot_dimension_numbers<[1], [0], [0], [1], [0, 0, 1, 1], [], []>} : vector<8x256xf32>, vector<256x256xf32>, vector<8x256xf32> -> vector<8x256xf32>
    %c288 = arith.constant 288 : index
    %c0_3 = arith.constant 0 : index
    %7 = vector.load %arg1[%c288, %c0_3] : memref<296x256xf32, #tpu.memory_space<vmem>>, vector<8x256xf32>
    %8 = vector.extract_strided_slice %7 {offsets = [0, 0], sizes = [1, 32], strides = [1, 1]} : vector<8x256xf32> to vector<1x32xf32>
    %9 = vector.extract_strided_slice %7 {offsets = [1, 0], sizes = [1, 32], strides = [1, 1]} : vector<8x256xf32> to vector<1x32xf32>
    %10 = vector.extract_strided_slice %7 {offsets = [2, 0], sizes = [1, 32], strides = [1, 1]} : vector<8x256xf32> to vector<1x32xf32>
    %11 = vector.extract_strided_slice %7 {offsets = [3, 0], sizes = [1, 1], strides = [1, 1]} : vector<8x256xf32> to vector<1x1xf32>
    %12 = vector.extract_strided_slice %7 {offsets = [4, 0], sizes = [1, 256], strides = [1, 1]} : vector<8x256xf32> to vector<1x256xf32>
    %13 = vector.broadcast %12 : vector<1x256xf32> to vector<8x256xf32>
    %14 = arith.addf %6, %13 : vector<8x256xf32>
    %c128_i32 = arith.constant 128 : i32
    %15 = tpu.dynamic_rotate %14 by %c128_i32 dim 1 : vector<8x256xf32>, i32 -> vector<8x256xf32>
    %16 = arith.maximumf %14, %15 : vector<8x256xf32>
    %c64_i32 = arith.constant 64 : i32
    %17 = tpu.dynamic_rotate %16 by %c64_i32 dim 1 : vector<8x256xf32>, i32 -> vector<8x256xf32>
    %18 = arith.maximumf %16, %17 : vector<8x256xf32>
    %c32_i32 = arith.constant 32 : i32
    %19 = tpu.dynamic_rotate %18 by %c32_i32 dim 1 : vector<8x256xf32>, i32 -> vector<8x256xf32>
    %20 = arith.maximumf %18, %19 : vector<8x256xf32>
    %21 = vector.extract_strided_slice %20 {offsets = [0, 0], sizes = [8, 32], strides = [1, 1]} : vector<8x256xf32> to vector<8x32xf32>
    %22 = vector.broadcast %9 : vector<1x32xf32> to vector<8x32xf32>
    %23 = arith.addf %21, %22 : vector<8x32xf32>
    %cst_4 = arith.constant 0.000000e+00 : f32
    %24 = vector.broadcast %cst_4 : f32 to vector<8x32xf32>
    %25 = arith.maximumf %23, %24 : vector<8x32xf32>
    %c256 = arith.constant 256 : index
    %c0_5 = arith.constant 0 : index
    %26 = vector.load %arg1[%c256, %c0_5] : memref<296x256xf32, #tpu.memory_space<vmem>>, vector<32x32xf32>
    %cst_6 = arith.constant dense<0.000000e+00> : vector<8x32xf32>
    %27 = tpu.matmul %25, %26, %cst_6 {dimension_numbers = #tpu.dot_dimension_numbers<[1], [0], [0], [1], [0, 0, 1, 1], [], []>} : vector<8x32xf32>, vector<32x32xf32>, vector<8x32xf32> -> vector<8x32xf32>
    %28 = vector.broadcast %8 : vector<1x32xf32> to vector<8x32xf32>
    %29 = arith.addf %27, %28 : vector<8x32xf32>
    %30 = arith.negf %29 : vector<8x32xf32>
    %31 = math.exp %30 : vector<8x32xf32>
    %cst_7 = arith.constant 1.000000e+00 : f32
    %32 = vector.broadcast %cst_7 : f32 to vector<8x32xf32>
    %33 = arith.addf %32, %31 : vector<8x32xf32>
    %34 = arith.divf %32, %33 : vector<8x32xf32>
    %cst_8 = arith.constant 0.000000e+00 : f32
    %35 = vector.broadcast %cst_8 : f32 to vector<8x32xf32>
    %36 = arith.maximumf %29, %35 : vector<8x32xf32>
    %37 = arith.mulf %34, %36 : vector<8x32xf32>
    %cst_9 = arith.constant 1.000000e+00 : f32
    %38 = vector.broadcast %cst_9 : f32 to vector<8x32xf32>
    %39 = arith.subf %38, %34 : vector<8x32xf32>
    %40 = arith.mulf %39, %25 : vector<8x32xf32>
    %41 = arith.addf %37, %40 : vector<8x32xf32>
    %42 = vector.broadcast %10 : vector<1x32xf32> to vector<8x32xf32>
    %43 = arith.mulf %41, %42 : vector<8x32xf32>
    %cst_10 = arith.constant dense<0.000000e+00> : vector<8xf32>
    %44 = vector.multi_reduction <add>, %43, %cst_10 [1] : vector<8x32xf32> to vector<8xf32>
    %45 = vector.shape_cast %44 : vector<8xf32> to vector<8x1xf32>
    %46 = vector.broadcast %11 : vector<1x1xf32> to vector<8x1xf32>
    %47 = arith.addf %45, %46 : vector<8x1xf32>
    %c0_11 = arith.constant 0 : index
    %c0_12 = arith.constant 0 : index
    %48 = vector.load %arg2[%c0_11, %c0_12] : memref<8x1xf32, #tpu.memory_space<vmem>>, vector<8x1xf32>
    tpu.vector_store %arg2[%c0_11, %c0_12], %47 {strides = array<i32>} : memref<8x1xf32, #tpu.memory_space<vmem>>, vector<8x1xf32>,
    return
  }
}

</mosaic_0001>

<bundles_post_ra>
// kernel: _forward_padded.1
= control target key start
LH: loop header
LB: loop body
LE: loop exit
PB: predicated region body
PF: predicated region fallthrough
CT: control target
= control target key end

     0   :  { %7 = vsyncpa [#allocation3], 0  ;;  %s436_s9 = smov [#allocation2]   ;;  %s491_s0 = inlined_call_operand.vmem [shape: s32[8,256], index: 0, kind: input, shape index: {}]   ;;  %s492_s1 = inlined_call_operand.hbm [shape: f32[296,256], index: 1, kind: input, shape index: {}]   ;;  %s493_s2 = inlined_call_operand.vmem [shape: f32[8,1], index: 2, kind: output, shape index: {}]  }
   0x1   :  { %s15_s10 = sshll.u32 %s436_s9, 4  ;;  %s412_s13 = scalar_lea.hbm %s492_s1, 9472  ;;  %s16_s10 = int_to_ptr.vmem [resolvable:$true] %s15_s10 }
   0x2   :  { %p413_p0 = scmp.ne.s32.totalorder %s492_s1, %s412_s13  ;;  %p416_p1 = scmp.lt.u32.totalorder %s412_s13, %s492_s1 }
   0x4   :  { %p418_p2 = pnand %p416_p1, %p413_p0 }
   0x6   :  { %421 = shalt.err (!%p418_p2)
}
   0x7   :  { %s422_s18 = scalar_lea.vmem %s16_s10, 9472  ;;  %p427_p4 = scmp.lt.s32.totalorder %s16_s10, %s16_s10 }
   0x8   :  { %p423_p3 = scmp.ne.s32.totalorder %s16_s10, %s422_s18  ;;  %p428_p5 = scmp.lt.s32.totalorder %s422_s18, %s422_s18 }
   0xa   :  { %p429_p6 = por %p428_p5, %p427_p4 }
   0xc   :  { %p430_p7 = pnand %p429_p6, %p423_p3 }
   0xe   :  { %433 = shalt.err (!%p430_p7)
}
   0xf   :  { %s437_s19 = smov 256   ;;  %s438_s20 = smov 16  }
  0x10   :  { %21 = dma.hbm_to_vmem [thread:$0]  %s492_s1, 9472, %s16_s10, [#allocation3], %s437_s19, %s437_s19, %s438_s20  }
  0x11   :  { %434 = dma.done.wait [#allocation3], 9472  }
  0x12   :  { %435 = vsyncadd [#allocation3], 4294957824  ;;  %v37_v0 = vld [vmem:[#allocation2 + $0x8] sm:$0xff]  ;;  %v39_v1 = vld [vmem:[#allocation2 + $0x18] sm:$0xff]  ;;  %v25_v25 = vlaneseq  ;;  %v439_v47 = vmov 1.0   ;;  %vm442_vm2 = vmmov 0  }
  0x13   :  { %v36_v2 = vld [vmem:[#allocation2] sm:$0xff]  ;;  %v329_v3 = vpack.c.bf16 %v39_v1, %v37_v0  ;;  %v38_v4 = vld [vmem:[#allocation2 + $0x10] sm:$0xff]  ;;  %v41_v5 = vld [vmem:[#allocation2 + $0x28] sm:$0xff]  ;;  %s444_s26 = smov 32   ;;  %vm202_vm3 = vcmask 261120   ;;  %vm300_vm4 = vcmask 7168  }
  0x14   :  { %v43_v6 = vld [vmem:[#allocation2 + $0x38] sm:$0xff]  ;;  %v331_v7 = vpack.c.bf16 %v38_v4, %v36_v2  ;;  %v40_v9 = vld [vmem:[#allocation2 + $0x20] sm:$0xff]  ;;  %v42_v10 = vld [vmem:[#allocation2 + $0x30] sm:$0xff]  ;;  %v473_v32 = vand.u32 127, %v25_v25 }
  0x15   :  { %v333_v8 = vpack.c.bf16 %v43_v6, %v41_v5  ;;  %v45_v11 = vld [vmem:[#allocation2 + $0x48] sm:$0xff]  ;;  %330 = vmatprep.subr.bf16.mxu0 %v329_v3  ;;  %v47_v12 = vld [vmem:[#allocation2 + $0x58] sm:$0xff]  ;;  %v335_v13 = vpack.c.bf16 %v42_v10, %v40_v9  ;;  %v44_v15 = vld [vmem:[#allocation2 + $0x40] sm:$0xff] }
  0x16   :  { %332 = vmatpush1.bf16.msra.mxu0 %v331_v7  ;;  %v337_v14 = vpack.c.bf16 %v47_v12, %v45_v11  ;;  %v46_v16 = vld [vmem:[#allocation2 + $0x50] sm:$0xff]  ;;  %v49_v17 = vld [vmem:[#allocation2 + $0x68] sm:$0xff]  ;;  %v51_v18 = vld [vmem:[#allocation2 + $0x78] sm:$0xff]  ;;  %v27_v39 = vadd.s32 128, %v473_v32 }
  0x17   :  { %334 = vmatprep.subr.bf16.mxu0 %v333_v8  ;;  %v339_v19 = vpack.c.bf16 %v46_v16, %v44_v15  ;;  %v341_v20 = vpack.c.bf16 %v51_v18, %v49_v17  ;;  %v48_v21 = vld [vmem:[#allocation2 + $0x60] sm:$0xff]  ;;  %v50_v22 = vld [vmem:[#allocation2 + $0x70] sm:$0xff]  ;;  %v53_v23 = vld [vmem:[#allocation2 + $0x88] sm:$0xff] }
  0x18   :  { %v55_v24 = vld [vmem:[#allocation2 + $0x98] sm:$0xff]  ;;  %v343_v26 = vpack.c.bf16 %v50_v22, %v48_v21  ;;  %v52_v28 = vld [vmem:[#allocation2 + $0x80] sm:$0xff]  ;;  %v54_v29 = vld [vmem:[#allocation2 + $0x90] sm:$0xff] }
  0x19   :  { %v345_v27 = vpack.c.bf16 %v55_v24, %v53_v23  ;;  %v57_v30 = vld [vmem:[#allocation2 + $0xa8] sm:$0xff]  ;;  %v59_v31 = vld [vmem:[#allocation2 + $0xb8] sm:$0xff]  ;;  %v347_v33 = vpack.c.bf16 %v54_v29, %v52_v28  ;;  %v56_v35 = vld [vmem:[#allocation2 + $0xa0] sm:$0xff] }
  0x1a   :  { %336 = vmatpush1.bf16.msra.mxu0 %v335_v13  ;;  %v349_v34 = vpack.c.bf16 %v59_v31, %v57_v30  ;;  %v58_v36 = vld [vmem:[#allocation2 + $0xb0] sm:$0xff]  ;;  %v61_v37 = vld [vmem:[#allocation2 + $0xc8] sm:$0xff]  ;;  %v63_v38 = vld [vmem:[#allocation2 + $0xd8] sm:$0xff] }
  0x1b   :  { %338 = vmatprep.subr.bf16.mxu0 %v337_v14  ;;  %v351_v40 = vpack.c.bf16 %v58_v36, %v56_v35  ;;  %v353_v41 = vpack.c.bf16 %v63_v38, %v61_v37  ;;  %v60_v42 = vld [vmem:[#allocation2 + $0xc0] sm:$0xff]  ;;  %v62_v43 = vld [vmem:[#allocation2 + $0xd0] sm:$0xff]  ;;  %v29_v44 = vld [vmem:[%s491_s0 + $0x8] sm:$0xff] }
  0x1c   :  { %v65_v45 = vld [vmem:[#allocation2 + $0xe8] sm:$0xff]  ;;  %v67_v46 = vld [vmem:[#allocation2 + $0xf8] sm:$0xff]  ;;  %vm31_vm0 = vcmp.eq.s32.totalorder %v27_v39, %v29_v44  ;;  %v355_v48 = vpack.c.bf16 %v62_v43, %v60_v42  ;;  %v64_v50 = vld [vmem:[#allocation2 + $0xe0] sm:$0xff] }
  0x1d   :  { %309 = vmatprep.mubr.msk.f32.mxu0 %vm31_vm0, %v439_v47  ;;  %v357_v49 = vpack.c.bf16 %v67_v46, %v65_v45  ;;  %v66_v51 = vld [vmem:[#allocation2 + $0xf0] sm:$0xff]  ;;  %v69_v52 = vld [vmem:[#allocation2 + $0x108] sm:$0xff]  ;;  %v71_v53 = vld [vmem:[#allocation2 + $0x118] sm:$0xff]  ;;  %v440_v46 = vmov 0.0|0.0  }
  0x1e   :  { %340 = vmatpush1.bf16.msra.mxu0 %v339_v19  ;;  %v359_v54 = vpack.c.bf16 %v66_v51, %v64_v50  ;;  %v361_v55 = vpack.c.bf16 %v71_v53, %v69_v52  ;;  %v68_v56 = vld [vmem:[#allocation2 + $0x100] sm:$0xff]  ;;  %v70_v57 = vld [vmem:[#allocation2 + $0x110] sm:$0xff]  ;;  %v73_v58 = vld [vmem:[#allocation2 + $0x128] sm:$0xff]  ;;  %393 = vmatprep.subr.bf16.mxu1 %v440_v46 }
  0x1f   :  { %342 = vmatprep.subr.bf16.mxu0 %v341_v20  ;;  %v75_v59 = vld [vmem:[#allocation2 + $0x138] sm:$0xff]  ;;  %v363_v60 = vpack.c.bf16 %v70_v57, %v68_v56  ;;  %v72_v62 = vld [vmem:[#allocation2 + $0x120] sm:$0xff]  ;;  %v74_v63 = vld [vmem:[#allocation2 + $0x130] sm:$0xff]  ;;  %v443_v56 = vmov 0.0  }
  0x20   :  { %v365_v61 = vpack.c.bf16 %v75_v59, %v73_v58  ;;  %v77_v0 = vld [vmem:[#allocation2 + $0x148] sm:$0xff]  ;;  %v79_v1 = vld [vmem:[#allocation2 + $0x158] sm:$0xff]  ;;  %v367_v2 = vpack.c.bf16 %v74_v63, %v72_v62  ;;  %v76_v4 = vld [vmem:[#allocation2 + $0x140] sm:$0xff]  ;;  %326 = vmatprep.mubr.msk.f32.mxu1 %vm442_vm2, %v443_v56 }
  0x21   :  { %v369_v3 = vpack.c.bf16 %v79_v1, %v77_v0  ;;  %v78_v5 = vld [vmem:[#allocation2 + $0x150] sm:$0xff]  ;;  %v81_v6 = vld [vmem:[#allocation2 + $0x168] sm:$0xff]  ;;  %v83_v7 = vld [vmem:[#allocation2 + $0x178] sm:$0xff] }
  0x22   :  { %344 = vmatpush1.bf16.msra.mxu0 %v343_v26  ;;  %v371_v8 = vpack.c.bf16 %v78_v5, %v76_v4  ;;  %v373_v9 = vpack.c.bf16 %v83_v7, %v81_v6  ;;  %v80_v10 = vld [vmem:[#allocation2 + $0x160] sm:$0xff]  ;;  %v82_v11 = vld [vmem:[#allocation2 + $0x170] sm:$0xff]  ;;  %v85_v12 = vld [vmem:[#allocation2 + $0x188] sm:$0xff] }
  0x23   :  { %346 = vmatprep.subr.bf16.mxu0 %v345_v27  ;;  %v87_v13 = vld [vmem:[#allocation2 + $0x198] sm:$0xff]  ;;  %v375_v14 = vpack.c.bf16 %v82_v11, %v80_v10  ;;  %v84_v16 = vld [vmem:[#allocation2 + $0x180] sm:$0xff]  ;;  %v86_v17 = vld [vmem:[#allocation2 + $0x190] sm:$0xff] }
  0x24   :  { %v377_v15 = vpack.c.bf16 %v87_v13, %v85_v12  ;;  %v89_v18 = vld [vmem:[#allocation2 + $0x1a8] sm:$0xff]  ;;  %v91_v19 = vld [vmem:[#allocation2 + $0x1b8] sm:$0xff]  ;;  %v379_v20 = vpack.c.bf16 %v86_v17, %v84_v16  ;;  %v88_v22 = vld [vmem:[#allocation2 + $0x1a0] sm:$0xff] }
  0x25   :  { %v381_v21 = vpack.c.bf16 %v91_v19, %v89_v18  ;;  %v90_v23 = vld [vmem:[#allocation2 + $0x1b0] sm:$0xff]  ;;  %v93_v24 = vld [vmem:[#allocation2 + $0x1c8] sm:$0xff]  ;;  %v95_v26 = vld [vmem:[#allocation2 + $0x1d8] sm:$0xff] }
  0x26   :  { %348 = vmatpush1.bf16.msra.mxu0 %v347_v33  ;;  %v383_v27 = vpack.c.bf16 %v90_v23, %v88_v22  ;;  %v385_v28 = vpack.c.bf16 %v95_v26, %v93_v24  ;;  %v92_v29 = vld [vmem:[#allocation2 + $0x1c0] sm:$0xff]  ;;  %v94_v30 = vld [vmem:[#allocation2 + $0x1d0] sm:$0xff]  ;;  %v97_v31 = vld [vmem:[#allocation2 + $0x1e8] sm:$0xff] }
  0x27   :  { %350 = vmatprep.subr.bf16.mxu0 %v349_v34  ;;  %v99_v33 = vld [vmem:[#allocation2 + $0x1f8] sm:$0xff]  ;;  %v387_v34 = vpack.c.bf16 %v94_v30, %v92_v29  ;;  %v96_v36 = vld [vmem:[#allocation2 + $0x1e0] sm:$0xff]  ;;  %v98_v37 = vld [vmem:[#allocation2 + $0x1f0] sm:$0xff] }
  0x28   :  { %v389_v35 = vpack.c.bf16 %v99_v33, %v97_v31  ;;  %v391_v38 = vpack.c.bf16 %v98_v37, %v96_v36  ;;  %v28_v39 = vld [vmem:[%s491_s0] sm:$0xff]  ;;  %v101_v43 = vld [vmem:[#allocation2 + $0x248] sm:$0xff]  ;;  %v195_v45 = vld [vmem:[#allocation2 + $0x210] sm:$0xff]  ;;  %s441_s0 = smov 64  }
  0x29   :  { %vm30_vm1 = vcmp.eq.s32.totalorder %v473_v32, %v28_v39  ;;  %v100_v42 = vld [vmem:[#allocation2 + $0x240] sm:$0xff] }
  0x2a   :  { %352 = vmatpush1.bf16.msra.mxu0 %v351_v40  ;;  %v103_v40 = vshrl.u32 %v25_v25, 7  ;;  %v194_v44 = vld [vmem:[#allocation2 + $0x200] sm:$0xff] }
  0x2b   :  { %354 = vmatprep.subr.bf16.mxu0 %v353_v41  ;;  %v196_v25 = vld [vmem:[#allocation2 + $0x220] sm:$0xff] }
  0x2c   :  { %v104_v41 = vsub.s32 4, %v103_v40  ;;  %v190_v59 = vsub.s32 1, %v103_v40  ;;  %v200_v1 = vsub.s32 0, %v103_v40  ;;  %v297_v19 = vsub.s32 3, %v103_v40 }
  0x2e   :  { %356 = vmatpush1.bf16.msra.mxu0 %v355_v48  ;;  %v394_v48 = vpack.c.bf16 %v195_v45, %v194_v44  ;;  %v109_v50 = vrot.slane %v101_v43, %v104_v41 }
  0x2f   :  { %358 = vmatprep.subr.bf16.mxu0 %v357_v49  ;;  %v105_v49 = vrot.slane %v100_v42, %v104_v41 }
  0x30   :  { %395 = vmatpush3.bf16.msra.mxu1 %v394_v48 }
  0x31   :  { %396 = vmatprep.subr.bf16.mxu1 %v440_v46 }
  0x32   :  { %360 = vmatpush1.bf16.msra.mxu0 %v359_v54 }
  0x33   :  { %362 = vmatprep.subr.bf16.mxu0 %v361_v55 }
  0x36   :  { %364 = vmatpush1.bf16.msra.mxu0 %v363_v60  ;;  %v191_v60 = vrot.slane %v100_v42, %v190_v59 }
  0x37   :  { %366 = vmatprep.subr.bf16.mxu0 %v365_v61 }
  0x3a   :  { %368 = vmatpush1.bf16.msra.mxu0 %v367_v2  ;;  %v201_v2 = vrot.slane %v100_v42, %v200_v1 }
  0x3b   :  { %370 = vmatprep.subr.bf16.mxu0 %v369_v3 }
  0x3e   :  { %372 = vmatpush1.bf16.msra.mxu0 %v371_v8 }
  0x3f   :  { %374 = vmatprep.subr.bf16.mxu0 %v373_v9  ;;  %v289_v9 = vsub.s32 2, %v103_v40 }
  0x42   :  { %376 = vmatpush1.bf16.msra.mxu0 %v375_v14 }
  0x43   :  { %378 = vmatprep.subr.bf16.mxu0 %v377_v15  ;;  %v290_v15 = vrot.slane %v100_v42, %v289_v9 }
  0x46   :  { %380 = vmatpush1.bf16.msra.mxu0 %v379_v20  ;;  %v298_v20 = vrot.slane %v100_v42, %v297_v19 }
  0x47   :  { %382 = vmatprep.subr.bf16.mxu0 %v381_v21 }
  0x4a   :  { %384 = vmatpush1.bf16.msra.mxu0 %v383_v27 }
  0x4b   :  { %386 = vmatprep.subr.bf16.mxu0 %v385_v28 }
  0x4e   :  { %388 = vmatpush1.bf16.msra.mxu0 %v387_v34 }
  0x4f   :  { %390 = vmatprep.subr.bf16.mxu0 %v389_v35 }
  0x52   :  { %392 = vmatpush1.bf16.msra.mxu0 %v391_v38 }
  0x55   :  { %310 = vmatmul.mubr.msk.f32.vlgmr.msra.gmra.mrb[0].mxu0 %vm30_vm1, %v439_v47  ;;  %v197_v47 = vld [vmem:[#allocation2 + $0x230] sm:$0xff] }
  0x56   :  { %v397_v55 = vpack.c.bf16 %v197_v47, %v196_v25 }
  0x58   :  { %398 = vmatpush3.bf16.msra.mxu1 %v397_v55 }
 0x128   :  { %v176_v51 = vpop.f32.mrb[0].mxu0 }
 0x129   :  { %v177_v52 = vadd.f32 %v176_v51, %v105_v49  ;;  %v178_v53 = vpop.f32.mrb[1].mxu0 }
 0x12a   :  { %v179_v32 = vadd.f32 %v178_v53, %v109_v50 }
 0x12c   :  { %v181_v54 = vmax.f32 %v177_v52, %v179_v32 }
 0x12e   :  { %182 = vrot.lane.b32.xlu0 %v181_v54, %s441_s0 }
 0x1a0   :  { %v183_v57 = vpop.permute.xlu0 %182 }
 0x1a1   :  { %v184_v58 = vmax.f32 %v181_v54, %v183_v57 }
 0x1a3   :  { %185 = vrot.lane.b32.xlu0 %v184_v58, %s444_s26 }
 0x215   :  { %v186_v61 = vpop.permute.xlu0 %185 }
 0x216   :  { %v187_v62 = vmax.f32 %v184_v58, %v186_v61 }
 0x218   :  { %v192_v63 = vadd.f32 %v191_v60, %v187_v62 }
 0x21a   :  { %v193_v0 = vmax.f32 %v192_v63, 0.0 }
 0x21c   :  { %327 = vmatmul.mubr.msk.f32.vlgmr.msra.gmra.mrb[0].mxu1 %vm202_vm3, %v193_v0 }
 0x2ef   :  { %v272_v3 = vpop.f32.mrb[0].mxu1 }
 0x2f0   :  { %v273_v4 = vadd.f32 %v272_v3, %v201_v2  ;;  %v328_v5 = vpop.f32.mrb[1].mxu1 }
 0x2f2   :  { %v312_v6 = vmul.f32 -1.442695, %v273_v4  ;;  %v282_v11 = vmax.f32 %v273_v4, 0.0 }
 0x2f4   :  { %408 = vpow2.f32 %v312_v6 }
 0x2fe   :  { %v409_v7 = vpop.eup %408 }
 0x2ff   :  { %v279_v8 = vadd.f32 1.0, %v409_v7 }
 0x301   :  { %410 = vrcp.f32 %v279_v8 }
 0x30b   :  { %v411_v10 = vpop.eup %410 }
 0x30c   :  { %v284_v12 = vsub.f32 1.0, %v411_v10  ;;  %v283_v13 = vmul.f32 %v411_v10, %v282_v11 }
 0x30e   :  { %v285_v14 = vmul.f32 %v284_v12, %v193_v0 }
 0x310   :  { %v286_v16 = vadd.f32 %v285_v14, %v283_v13 }
 0x312   :  { %v291_v17 = vmul.f32 %v290_v15, %v286_v16 }
 0x314   :  { %v292_v18 = vsel %vm202_vm3, %v291_v17, 0.0 }
 0x315   :  { %293 = vadd.xlane.f32.xlu1 %v292_v18 }
 0x3a2   :  { %v294_v21 = vpop.xlane.xlu1 %293 }
 0x3a3   :  { %v299_v22 = vadd.f32 %v298_v20, %v294_v21 }
 0x3a5   :  { %301 = vst.msk [vmem:[%s493_s2] sm:$0xff] %vm300_vm4, %v299_v22 }
 0x3a6   :  { %306 = vsyncpa [#allocation3], 1 }

</bundles_post_ra>
